<compile_context>
chip_gen: v6e
topology: v6e:2x2x1
jax: 0.10.0
libtpu: 0.0.40
codegen_flags: <defaults>
</compile_context>

<pallas_src>
import functools

import jax
import jax.numpy as jnp
from jax import lax
from jax.experimental import pallas as pl
from jax.experimental.pallas import tpu as pltpu


def _round_up(x, m):
    return ((x + m - 1) // m) * m


def _embedding_concat_kernel(
    x_ref,        # (tm, input_dim)        compute_dtype
    tag_ref,      # (tm, 1)  i32  (combined index space: [0, tags_num))
    pred_ref,     # (tm, 1)  i32  (offset by tags_num)
    pretag_ref,   # (tm, 1)  i32  (offset by tags_num + predicate_num)
    w_ref,        # (input_dim, proj_dim)  compute_dtype
    b_ref,        # (1, proj_dim)          f32
    tbl_ref,      # (comb_pad, emb_dim)    compute_dtype  (block-diag stacked tables)
    o_ref,        # (tm, proj_dim + emb_dim)  f32
    *,
    comb_pad,
    proj_dim,
):
    tm = x_ref.shape[0]

    # Linear projection: (tm, D) @ (D, 384) -> MXU, f32 accumulate, f32 bias add.
    proj = jnp.dot(x_ref[...], w_ref[...], preferred_element_type=jnp.float32)
    proj = proj + b_ref[...]

    # Fused embedding lookup: one combined one-hot over the disjoint id ranges
    # of tag / predicate / pretag, one MXU matmul against the stacked table.
    iota = lax.broadcasted_iota(jnp.int32, (tm, comb_pad), 1)
    oh = ((iota == tag_ref[...])
          | (iota == pred_ref[...])
          | (iota == pretag_ref[...]))
    emb = jnp.dot(oh.astype(tbl_ref.dtype), tbl_ref[...],
                  preferred_element_type=jnp.float32)

    # Single lane-dense, 128-aligned, full-width store (proj_dim = 384).
    o_ref[...] = jnp.concatenate([proj, emb], axis=-1).astype(o_ref.dtype)


def embedding_layer_concat(x, tag_ids, pretag_ids, predicate_mask, params,
                           *, row_tile=512, compute_dtype=jnp.float32):
    """x: (B, S, input_dim) f32; ids: (B, S) int. Returns (B, S, 768) f32.

    compute_dtype=jnp.bfloat16 is recommended on v6e/v7x (keep f32 on v5e).
    """
    B, S, input_dim = x.shape
    N = B * S

    W = params["linear_w"]                      # (input_dim, proj_dim)
    b = params["linear_b"]                      # (proj_dim,)
    tag_tbl = params["tag_embeddings"]          # (tags_num, tag_dim)
    pred_tbl = params["predicate_embeddings"]   # (predicate_num, pred_dim)
    pretag_tbl = params["pretag_embeddings"]    # (pretag_num, pretag_dim)

    proj_dim = W.shape[1]
    tags_num, tag_dim = tag_tbl.shape
    predicate_num, pred_dim = pred_tbl.shape
    pretag_num, pretag_dim = pretag_tbl.shape
    emb_dim = tag_dim + pred_dim + pretag_dim
    out_dim = proj_dim + emb_dim

    # ---- block-diagonal stacked embedding table, built once on host/XLA side.
    comb_num = tags_num + predicate_num + pretag_num
    comb_pad = _round_up(comb_num, 8)
    tbl = jnp.zeros((comb_pad, emb_dim), jnp.float32)
    tbl = tbl.at[0:tags_num, 0:tag_dim].set(tag_tbl)
    tbl = tbl.at[tags_num:tags_num + predicate_num,
                 tag_dim:tag_dim + pred_dim].set(pred_tbl)
    tbl = tbl.at[tags_num + predicate_num:comb_num,
                 tag_dim + pred_dim:].set(pretag_tbl)

    # ---- row tiling: big tiles for MXU/M and per-step overhead, 8-aligned,
    #      with zero-padding of N (padded rows are sliced off at the end).
    assert row_tile % 8 == 0, "row_tile must be a multiple of 8"
    tile = min(row_tile, _round_up(N, 8))
    n_pad = _round_up(N, tile)

    x2 = x.reshape(N, input_dim)
    tag2 = tag_ids.reshape(N, 1).astype(jnp.int32)
    pred2 = predicate_mask.reshape(N, 1).astype(jnp.int32) + tags_num
    pretag2 = pretag_ids.reshape(N, 1).astype(jnp.int32) + tags_num + predicate_num
    if n_pad != N:
        pad = n_pad - N
        x2 = jnp.pad(x2, ((0, pad), (0, 0)))
        tag2 = jnp.pad(tag2, ((0, pad), (0, 0)))
        pred2 = jnp.pad(pred2, ((0, pad), (0, 0)))
        pretag2 = jnp.pad(pretag2, ((0, pad), (0, 0)))

    x2 = x2.astype(compute_dtype)
    Wc = W.astype(compute_dtype)
    tblc = tbl.astype(compute_dtype)
    b2 = b.reshape(1, proj_dim).astype(jnp.float32)

    kernel = functools.partial(
        _embedding_concat_kernel, comb_pad=comb_pad, proj_dim=proj_dim)

    itemsize = jnp.dtype(compute_dtype).itemsize
    flops = 2 * n_pad * (input_dim * proj_dim + comb_pad * emb_dim)
    bytes_accessed = (
        n_pad * input_dim * itemsize            # x
        + 3 * n_pad * 4                         # ids
        + input_dim * proj_dim * itemsize       # W
        + comb_pad * emb_dim * itemsize         # stacked table
        + proj_dim * 4                          # bias
        + n_pad * out_dim * 4)                  # output
    cost = pl.CostEstimate(flops=flops, transcendentals=0,
                           bytes_accessed=bytes_accessed)

    grid = (n_pad // tile,)
    out = pl.pallas_call(
        kernel,
        out_shape=jax.ShapeDtypeStruct((n_pad, out_dim), jnp.float32),
        grid_spec=pltpu.PrefetchScalarGridSpec(
            num_scalar_prefetch=0,
            grid=grid,
            in_specs=[
                pl.BlockSpec((tile, input_dim), lambda i: (i, 0)),    # x
                pl.BlockSpec((tile, 1), lambda i: (i, 0)),            # tag ids
                pl.BlockSpec((tile, 1), lambda i: (i, 0)),            # predicate ids
                pl.BlockSpec((tile, 1), lambda i: (i, 0)),            # pretag ids
                # Grid-invariant operands: constant index_map keeps them VMEM-resident.
                pl.BlockSpec((input_dim, proj_dim), lambda i: (0, 0)),  # W
                pl.BlockSpec((1, proj_dim), lambda i: (0, 0)),          # bias
                pl.BlockSpec((comb_pad, emb_dim), lambda i: (0, 0)),    # stacked table
            ],
            out_specs=pl.BlockSpec((tile, out_dim), lambda i: (i, 0)),
        ),
        compiler_params=pltpu.CompilerParams(
            dimension_semantics=("parallel",),
            vmem_limit_bytes=64 * 1024 * 1024),
        cost_estimate=cost,
    )(x2, tag2, pred2, pretag2, Wc, b2, tblc)

    return out[:N].reshape(B, S, out_dim)


def _reference(x, tag_ids, pretag_ids, predicate_mask, params):
    return jnp.concatenate(
        [
            x @ params["linear_w"] + params["linear_b"],
            params["tag_embeddings"][tag_ids],
            params["predicate_embeddings"][predicate_mask],
            params["pretag_embeddings"][pretag_ids],
        ],
        axis=-1,
    )


if __name__ == "__main__":
    # Module config (defaults of EmbeddingLayer, mode='concat')
    input_dim = 768
    proj_dim = 384
    tag_dim = pred_dim = pretag_dim = 128
    tags_num, pretag_num, predicate_num = 20, 12, 2

    key = jax.random.PRNGKey(0)
    ks = jax.random.split(key, 9)

    params = {
        # nn.Linear(768, 384): weight stored transposed as (768, 384)
        "linear_w": jax.random.normal(ks[4], (input_dim, proj_dim), jnp.float32) * 0.02,
        "linear_b": jax.random.normal(ks[5], (proj_dim,), jnp.float32) * 0.02,
        # frozen randn embedding tables (Parameter(..., requires_grad=False))
        "tag_embeddings": jax.random.normal(ks[6], (tags_num, tag_dim), jnp.float32),
        "predicate_embeddings": jax.random.normal(ks[7], (predicate_num, pred_dim), jnp.float32),
        "pretag_embeddings": jax.random.normal(ks[8], (pretag_num, pretag_dim), jnp.float32),
    }

    out_dim = proj_dim + tag_dim + pred_dim + pretag_dim

    # ---- test 1: small forward shapes (batch=2, seq=8), no row padding needed.
    B, S = 2, 8
    x = jax.random.normal(ks[0], (B, S, input_dim), jnp.float32)
    tag_ids = jax.random.randint(ks[1], (B, S), 0, tags_num, jnp.int32)
    pretag_ids = jax.random.randint(ks[2], (B, S), 0, pretag_num, jnp.int32)
    predicate_mask = jax.random.randint(ks[3], (B, S), 0, predicate_num, jnp.int32)

    out = embedding_layer_concat(x, tag_ids, pretag_ids, predicate_mask, params)
    out = jax.block_until_ready(out)
    ref = _reference(x, tag_ids, pretag_ids, predicate_mask, params)
    assert out.shape == (B, S, out_dim), out.shape
    assert jnp.allclose(out, ref, atol=1e-4, rtol=1e-4), "mismatch vs reference (test 1)"

    # ---- test 2: ragged N (B*S not a multiple of 8) exercises the padding path.
    B2, S2 = 3, 7
    kb = jax.random.split(jax.random.PRNGKey(1), 4)
    x_b = jax.random.normal(kb[0], (B2, S2, input_dim), jnp.float32)
    tag_b = jax.random.randint(kb[1], (B2, S2), 0, tags_num, jnp.int32)
    pretag_b = jax.random.randint(kb[2], (B2, S2), 0, pretag_num, jnp.int32)
    pred_b = jax.random.randint(kb[3], (B2, S2), 0, predicate_num, jnp.int32)

    out_b = embedding_layer_concat(x_b, tag_b, pretag_b, pred_b, params, row_tile=256)
    out_b = jax.block_until_ready(out_b)
    ref_b = _reference(x_b, tag_b, pretag_b, pred_b, params)
    assert out_b.shape == (B2, S2, out_dim), out_b.shape
    assert jnp.allclose(out_b, ref_b, atol=1e-4, rtol=1e-4), "mismatch vs reference (test 2)"

    print("KERNEL_OK")
</pallas_src>

<mosaic_0001>
module attributes {stable_mosaic.version = 11 : i64} {
  func.func @_embedding_concat_kernel(%arg0: i32, %arg1: memref<16x768xf32, #tpu.memory_space<vmem>>, %arg2: memref<16x1xi32, #tpu.memory_space<vmem>>, %arg3: memref<16x1xi32, #tpu.memory_space<vmem>>, %arg4: memref<16x1xi32, #tpu.memory_space<vmem>>, %arg5: memref<768x384xf32, #tpu.memory_space<vmem>>, %arg6: memref<1x384xf32, #tpu.memory_space<vmem>>, %arg7: memref<40x384xf32, #tpu.memory_space<vmem>>, %arg8: memref<16x768xf32, #tpu.memory_space<vmem>>) attributes {dimension_semantics = [#tpu.dimension_semantics<parallel>], iteration_bounds = array<i64: 1>, scalar_prefetch = 0 : i64, scratch_operands = 0 : i64, tpu.core_type = #tpu.core_type<tc>, window_params = [{transform_indices = @transform_0, window_bounds = array<i64: 16, 768>}, {transform_indices = @transform_1, window_bounds = array<i64: 16, 1>}, {transform_indices = @transform_2, window_bounds = array<i64: 16, 1>}, {transform_indices = @transform_3, window_bounds = array<i64: 16, 1>}, {pipeline_mode = #tpu.pipeline_mode<synchronous>, transform_indices = @transform_4, window_bounds = array<i64: 768, 384>}, {pipeline_mode = #tpu.pipeline_mode<synchronous>, transform_indices = @transform_5, window_bounds = array<i64: 1, 384>}, {pipeline_mode = #tpu.pipeline_mode<synchronous>, transform_indices = @transform_6, window_bounds = array<i64: 40, 384>}, {transform_indices = @transform_7, window_bounds = array<i64: 16, 768>}]} {
    %c0 = arith.constant 0 : index
    %c0_0 = arith.constant 0 : index
    %0 = vector.load %arg1[%c0, %c0_0] : memref<16x768xf32, #tpu.memory_space<vmem>>, vector<16x768xf32>
    %c0_1 = arith.constant 0 : index
    %c0_2 = arith.constant 0 : index
    %1 = vector.load %arg5[%c0_1, %c0_2] : memref<768x384xf32, #tpu.memory_space<vmem>>, vector<768x384xf32>
    %cst = arith.constant dense<0.000000e+00> : vector<16x384xf32>
    %2 = tpu.matmul %0, %1, %cst {dimension_numbers = #tpu.dot_dimension_numbers<[1], [0], [0], [1], [0, 0, 1, 1], [], []>} : vector<16x768xf32>, vector<768x384xf32>, vector<16x384xf32> -> vector<16x384xf32>
    %c0_3 = arith.constant 0 : index
    %c0_4 = arith.constant 0 : index
    %3 = vector.load %arg6[%c0_3, %c0_4] : memref<1x384xf32, #tpu.memory_space<vmem>>, vector<1x384xf32>
    %4 = vector.broadcast %3 : vector<1x384xf32> to vector<16x384xf32>
    %5 = arith.addf %2, %4 : vector<16x384xf32>
    %6 = tpu.iota {dimensions = array<i32: 1>} : vector<16x40xi32>
    %c0_5 = arith.constant 0 : index
    %c0_6 = arith.constant 0 : index
    %7 = vector.load %arg2[%c0_5, %c0_6] : memref<16x1xi32, #tpu.memory_space<vmem>>, vector<16x1xi32>
    %8 = vector.broadcast %7 : vector<16x1xi32> to vector<16x40xi32>
    %9 = arith.cmpi eq, %6, %8 : vector<16x40xi32>
    %c0_7 = arith.constant 0 : index
    %c0_8 = arith.constant 0 : index
    %10 = vector.load %arg3[%c0_7, %c0_8] : memref<16x1xi32, #tpu.memory_space<vmem>>, vector<16x1xi32>
    %11 = vector.broadcast %10 : vector<16x1xi32> to vector<16x40xi32>
    %12 = arith.cmpi eq, %6, %11 : vector<16x40xi32>
    %13 = arith.ori %9, %12 : vector<16x40xi1>
    %c0_9 = arith.constant 0 : index
    %c0_10 = arith.constant 0 : index
    %14 = vector.load %arg4[%c0_9, %c0_10] : memref<16x1xi32, #tpu.memory_space<vmem>>, vector<16x1xi32>
    %15 = vector.broadcast %14 : vector<16x1xi32> to vector<16x40xi32>
    %16 = arith.cmpi eq, %6, %15 : vector<16x40xi32>
    %17 = arith.ori %13, %16 : vector<16x40xi1>
    %18 = arith.extui %17 : vector<16x40xi1> to vector<16x40xi32>
    %19 = arith.sitofp %18 : vector<16x40xi32> to vector<16x40xf32>
    %c0_11 = arith.constant 0 : index
    %c0_12 = arith.constant 0 : index
    %20 = vector.load %arg7[%c0_11, %c0_12] : memref<40x384xf32, #tpu.memory_space<vmem>>, vector<40x384xf32>
    %cst_13 = arith.constant dense<0.000000e+00> : vector<16x384xf32>
    %21 = tpu.matmul %19, %20, %cst_13 {dimension_numbers = #tpu.dot_dimension_numbers<[1], [0], [0], [1], [0, 0, 1, 1], [], []>} : vector<16x40xf32>, vector<40x384xf32>, vector<16x384xf32> -> vector<16x384xf32>
    %22 = tpu.concatenate %5, %21 in 1 : vector<16x384xf32>, vector<16x384xf32> -> vector<16x768xf32>
    %c0_14 = arith.constant 0 : index
    %c0_15 = arith.constant 0 : index
    %23 = vector.load %arg8[%c0_14, %c0_15] : memref<16x768xf32, #tpu.memory_space<vmem>>, vector<16x768xf32>
    tpu.vector_store %arg8[%c0_14, %c0_15], %22 {strides = array<i32>} : memref<16x768xf32, #tpu.memory_space<vmem>>, vector<16x768xf32>,
    return
  }
  func.func @transform_0(%arg0: i32) -> (i32, i32) {
    %c0_i32 = arith.constant 0 : i32
    %c0_i32_0 = arith.constant 0 : i32
    return %arg0, %c0_i32 : i32, i32
  }
  func.func @transform_1(%arg0: i32) -> (i32, i32) {
    %c0_i32 = arith.constant 0 : i32
    %c0_i32_0 = arith.constant 0 : i32
    return %arg0, %c0_i32 : i32, i32
  }
  func.func @transform_2(%arg0: i32) -> (i32, i32) {
    %c0_i32 = arith.constant 0 : i32
    %c0_i32_0 = arith.constant 0 : i32
    return %arg0, %c0_i32 : i32, i32
  }
  func.func @transform_3(%arg0: i32) -> (i32, i32) {
    %c0_i32 = arith.constant 0 : i32
    %c0_i32_0 = arith.constant 0 : i32
    return %arg0, %c0_i32 : i32, i32
  }
  func.func @transform_4(%arg0: i32) -> (i32, i32) {
    %c0_i32 = arith.constant 0 : i32
    %c0_i32_0 = arith.constant 0 : i32
    %c0_i32_1 = arith.constant 0 : i32
    return %c0_i32, %c0_i32_0 : i32, i32
  }
  func.func @transform_5(%arg0: i32) -> (i32, i32) {
    %c0_i32 = arith.constant 0 : i32
    %c0_i32_0 = arith.constant 0 : i32
    %c0_i32_1 = arith.constant 0 : i32
    return %c0_i32, %c0_i32_0 : i32, i32
  }
  func.func @transform_6(%arg0: i32) -> (i32, i32) {
    %c0_i32 = arith.constant 0 : i32
    %c0_i32_0 = arith.constant 0 : i32
    %c0_i32_1 = arith.constant 0 : i32
    return %c0_i32, %c0_i32_0 : i32, i32
  }
  func.func @transform_7(%arg0: i32) -> (i32, i32) {
    %c0_i32 = arith.constant 0 : i32
    %c0_i32_0 = arith.constant 0 : i32
    return %arg0, %c0_i32 : i32, i32
  }
}

</mosaic_0001>

<bundles_post_ra>
// kernel: tpu_custom_call.1
= control target key start
LH: loop header
LB: loop body
LE: loop exit
PB: predicated region body
PF: predicated region fallthrough
CT: control target
= control target key end

     0   :  { %12 = vsyncpa [#allocation3], 0  ;;  %s1521_s0 = inlined_call_operand.hbm [shape: f32[16,768], index: 0, kind: input, shape index: {}]   ;;  %s1522_s1 = inlined_call_operand.vmem [shape: s32[16,1], index: 1, kind: input, shape index: {}]   ;;  %s1523_s2 = inlined_call_operand.vmem [shape: s32[16,1], index: 2, kind: input, shape index: {}]   ;;  %s1524_s3 = inlined_call_operand.vmem [shape: s32[16,1], index: 3, kind: input, shape index: {}]   ;;  %s1525_s4 = inlined_call_operand.hbm [shape: f32[768,384], index: 4, kind: input, shape index: {}]   ;;  %s1526_s5 = inlined_call_operand.hbm [shape: f32[1,384], index: 5, kind: input, shape index: {}]   ;;  %s1527_s6 = inlined_call_operand.hbm [shape: f32[40,384], index: 6, kind: input, shape index: {}]   ;;  %s1528_s7 = inlined_call_operand.hbm [shape: f32[16,768], index: 7, kind: output, shape index: {}]  }
   0x1   :  { %13 = vsyncpa [#allocation6], 0 }
   0x2   :  { %14 = vsyncpa [#allocation9], 0 }
   0x3   :  { %15 = vsyncpa [#allocation4], 0  ;;  %s1359_s24 = smov [#allocation5]  }
   0x4   :  { %s39_s25 = sshll.u32 %s1359_s24, 4  ;;  %s40_s25 = int_to_ptr.vmem [resolvable:$true] %s39_s25 }
   0x5   :  { %s1259_s26 = scalar_lea.vmem %s40_s25, 36864  ;;  %p1264_p1 = scmp.lt.s32.totalorder %s40_s25, %s40_s25 }
   0x6   :  { %p1260_p0 = scmp.ne.s32.totalorder %s40_s25, %s1259_s26  ;;  %p1265_p2 = scmp.lt.s32.totalorder %s1259_s26, %s1259_s26 }
   0x8   :  { %p1266_p3 = por %p1265_p2, %p1264_p1 }
   0xa   :  { %p1267_p4 = pnand %p1266_p3, %p1260_p0 }
   0xc   :  { %1270 = shalt.err (!%p1267_p4)
}
   0xd   :  { %s1360_s27 = smov 384   ;;  %s1361_s28 = smov 24  }
   0xe   :  { %45 = dma.hbm_to_vmem [thread:$0]  %s1525_s4, 36864, %s40_s25, [#allocation6], %s1360_s27, %s1360_s27, %s1361_s28  }
   0xf   :  { %s1362_s8 = smov [#allocation2]  }
  0x10   :  { %s21_s9 = sshll.u32 %s1362_s8, 4  ;;  %s22_s9 = int_to_ptr.vmem [resolvable:$true] %s21_s9 }
  0x11   :  { %s1279_s10 = scalar_lea.vmem %s22_s9, 1536  ;;  %p1284_p6 = scmp.lt.s32.totalorder %s22_s9, %s22_s9 }
  0x12   :  { %p1280_p5 = scmp.ne.s32.totalorder %s22_s9, %s1279_s10  ;;  %p1285_p7 = scmp.lt.s32.totalorder %s1279_s10, %s1279_s10 }
  0x14   :  { %p1286_p8 = por %p1285_p7, %p1284_p6 }
  0x16   :  { %p1287_p9 = pnand %p1286_p8, %p1280_p5 }
  0x18   :  { %1290 = shalt.err (!%p1287_p9)
}
  0x19   :  { %s1363_s11 = smov 768   ;;  %s1364_s12 = smov 48  }
  0x1a   :  { %27 = dma.hbm_to_vmem [thread:$0]  %s1521_s0, 1536, %s22_s9, [#allocation3], %s1363_s11, %s1363_s11, %s1364_s12  }
  0x1b   :  { %s1365_s4 = smov [#allocation7]   ;;  %s1366_s16 = smov [#allocation8]  }
  0x1c   :  { %s52_s15 = sshll.u32 %s1365_s4, 4  ;;  %s61_s17 = sshll.u32 %s1366_s16, 4  ;;  %s53_s15 = int_to_ptr.vmem [resolvable:$true] %s52_s15  ;;  %s62_s17 = int_to_ptr.vmem [resolvable:$true] %s61_s17 }
  0x1d   :  { %s1299_s18 = scalar_lea.vmem %s53_s15, 48  ;;  %s1303_s19 = scalar_lea.vmem %s53_s15, 64 }
  0x1e   :  { %p1300_p10 = scmp.ne.s32.totalorder %s53_s15, %s1299_s18  ;;  %p1304_p11 = scmp.lt.s32.totalorder %s53_s15, %s53_s15 }
  0x1f   :  { %p1305_p12 = scmp.lt.s32.totalorder %s1303_s19, %s1299_s18 }
  0x21   :  { %p1306_p13 = por %p1305_p12, %p1304_p11 }
  0x23   :  { %p1307_p0 = pnand %p1306_p13, %p1300_p10 }
  0x25   :  { %1310 = shalt.err (!%p1307_p0)
}
  0x26   :  { %55 = dma.hbm_to_vmem [thread:$0]  %s1526_s5, 48, %s53_s15, [#allocation6]  }
  0x27   :  { %s1319_s22 = scalar_lea.vmem %s62_s17, 1920  ;;  %p1324_p2 = scmp.lt.s32.totalorder %s62_s17, %s62_s17 }
  0x28   :  { %p1320_p1 = scmp.ne.s32.totalorder %s62_s17, %s1319_s22  ;;  %p1325_p3 = scmp.lt.s32.totalorder %s1319_s22, %s1319_s22 }
  0x2a   :  { %p1326_p4 = por %p1325_p3, %p1324_p2 }
  0x2c   :  { %p1327_p5 = pnand %p1326_p4, %p1320_p1 }
  0x2e   :  { %1330 = shalt.err (!%p1327_p5)
}
  0x2f   :  { %67 = dma.hbm_to_vmem [thread:$0]  %s1527_s6, 1920, %s62_s17, [#allocation9], %s1360_s27, %s1360_s27, %s1361_s28  }
  0x30   :  { %1351 = dma.done.wait [#allocation3], 1536  }
  0x31   :  { %1352 = vsyncadd [#allocation3], 4294965760 }
  0x32   :  { %1353 = dma.done.wait [#allocation6], 36912  }
  0x33   :  { %1354 = vsyncadd [#allocation6], 4294930384 }
  0x34   :  { %1355 = dma.done.wait [#allocation9], 1920  }
  0x35   :  { %1356 = vsyncadd [#allocation9], 4294965376  ;;  %v1367_v0 = vmov 0   ;;  %v138_v1 = vld [vmem:[#allocation5 + $0x170] sm:$0xff]  ;;  %v137_v3 = vld [vmem:[#allocation5 + $0x168] sm:$0xff]  ;;  %vm908_vm8 = vcmask 326656  }
  0x36   :  { %1249 = vset.pattern.permute.xlu0 %v1367_v0  ;;  %1250 = vset.pattern.permute.xlu1 %v1367_v0  ;;  %v234_v2 = vld [vmem:[#allocation5 + $0x470] sm:$0xff]  ;;  %v233_v4 = vld [vmem:[#allocation5 + $0x468] sm:$0xff]  ;;  %v135_v5 = vld [vmem:[#allocation5 + $0x158] sm:$0xff] }
  0x37   :  { %397 = vmatprep.subr.mxu0 %v138_v1  ;;  %474 = vmatprep.subr.mxu1 %v234_v2  ;;  %v231_v6 = vld [vmem:[#allocation5 + $0x458] sm:$0xff]  ;;  %v134_v7 = vld [vmem:[#allocation5 + $0x150] sm:$0xff]  ;;  %v132_v9 = vld [vmem:[#allocation5 + $0x140] sm:$0xff] }
  0x38   :  { %398 = vmatpush1.msra.mxu0 %v137_v3  ;;  %475 = vmatpush1.msra.mxu1 %v233_v4  ;;  %v230_v8 = vld [vmem:[#allocation5 + $0x450] sm:$0xff]  ;;  %v228_v10 = vld [vmem:[#allocation5 + $0x440] sm:$0xff]  ;;  %v131_v11 = vld [vmem:[#allocation5 + $0x138] sm:$0xff] }
  0x39   :  { %399 = vmatprep.subr.mxu0 %v135_v5  ;;  %476 = vmatprep.subr.mxu1 %v231_v6  ;;  %v227_v12 = vld [vmem:[#allocation5 + $0x438] sm:$0xff]  ;;  %v129_v13 = vld [vmem:[#allocation5 + $0x128] sm:$0xff]  ;;  %v128_v15 = vld [vmem:[#allocation5 + $0x120] sm:$0xff] }
  0x3a   :  { %400 = vmatpush1.msra.mxu0 %v134_v7  ;;  %477 = vmatpush1.msra.mxu1 %v230_v8  ;;  %v225_v14 = vld [vmem:[#allocation5 + $0x428] sm:$0xff]  ;;  %v224_v16 = vld [vmem:[#allocation5 + $0x420] sm:$0xff]  ;;  %v126_v17 = vld [vmem:[#allocation5 + $0x110] sm:$0xff] }
  0x3b   :  { %401 = vmatprep.subr.mxu0 %v132_v9  ;;  %478 = vmatprep.subr.mxu1 %v228_v10  ;;  %v222_v18 = vld [vmem:[#allocation5 + $0x410] sm:$0xff]  ;;  %v125_v19 = vld [vmem:[#allocation5 + $0x108] sm:$0xff]  ;;  %v123_v21 = vld [vmem:[#allocation5 + $0xf8] sm:$0xff] }
  0x3c   :  { %402 = vmatpush1.msra.mxu0 %v131_v11  ;;  %479 = vmatpush1.msra.mxu1 %v227_v12  ;;  %v221_v20 = vld [vmem:[#allocation5 + $0x408] sm:$0xff]  ;;  %v219_v22 = vld [vmem:[#allocation5 + $0x3f8] sm:$0xff]  ;;  %v122_v23 = vld [vmem:[#allocation5 + $0xf0] sm:$0xff] }
  0x3d   :  { %403 = vmatprep.subr.mxu0 %v129_v13  ;;  %480 = vmatprep.subr.mxu1 %v225_v14  ;;  %v218_v24 = vld [vmem:[#allocation5 + $0x3f0] sm:$0xff]  ;;  %v855_v25 = vld [vmem:[%s1522_s1] sm:$0xff]  ;;  %v119_v28 = vld [vmem:[#allocation5 + $0xd8] sm:$0xff] }
  0x3e   :  { %404 = vmatpush1.msra.mxu0 %v128_v15  ;;  %481 = vmatpush1.msra.mxu1 %v224_v16  ;;  %v120_v26 = vld [vmem:[#allocation5 + $0xe0] sm:$0xff]  ;;  %v215_v29 = vld [vmem:[#allocation5 + $0x3d8] sm:$0xff]  ;;  %v117_v31 = vld [vmem:[#allocation5 + $0xc8] sm:$0xff] }
  0x3f   :  { %405 = vmatprep.subr.mxu0 %v126_v17  ;;  %482 = vmatprep.subr.mxu1 %v222_v18  ;;  %v216_v27 = vld [vmem:[#allocation5 + $0x3e0] sm:$0xff]  ;;  %v213_v32 = vld [vmem:[#allocation5 + $0x3c8] sm:$0xff]  ;;  %v114_v36 = vld [vmem:[#allocation5 + $0xb0] sm:$0xff] }
  0x40   :  { %406 = vmatpush1.msra.mxu0 %v125_v19  ;;  %483 = vmatpush1.msra.mxu1 %v221_v20  ;;  %v877_v30 = vld [vmem:[%s1524_s3] sm:$0xff]  ;;  %v210_v37 = vld [vmem:[#allocation5 + $0x3b0] sm:$0xff]  ;;  %v113_v38 = vld [vmem:[#allocation5 + $0xa8] sm:$0xff] }
  0x41   :  { %407 = vmatprep.subr.mxu0 %v123_v21  ;;  %484 = vmatprep.subr.mxu1 %v219_v22  ;;  %v116_v33 = vld [vmem:[#allocation5 + $0xc0] sm:$0xff]  ;;  %v209_v39 = vld [vmem:[#allocation5 + $0x3a8] sm:$0xff]  ;;  %v111_v41 = vld [vmem:[#allocation5 + $0x98] sm:$0xff] }
  0x42   :  { %408 = vmatpush1.msra.mxu0 %v122_v23  ;;  %485 = vmatpush1.msra.mxu1 %v218_v24  ;;  %v212_v34 = vld [vmem:[#allocation5 + $0x3c0] sm:$0xff]  ;;  %v856_v40 = vld [vmem:[%s1522_s1 + $0x8] sm:$0xff]  ;;  %v207_v42 = vld [vmem:[#allocation5 + $0x398] sm:$0xff] }
  0x43   :  { %858 = vperm.xlu0 %1249, %v855_v25   ;;  %409 = vmatprep.subr.mxu0 %v120_v26  ;;  %v865_v35 = vld [vmem:[%s1523_s2] sm:$0xff]  ;;  %v110_v43 = vld [vmem:[#allocation5 + $0x90] sm:$0xff]  ;;  %v866_v47 = vld [vmem:[%s1523_s2 + $0x8] sm:$0xff]  ;;  %s1369_s2 = smov [#allocation10]  }
  0x44   :  { %486 = vmatprep.subr.mxu1 %v216_v27  ;;  %410 = vmatpush1.msra.mxu0 %v119_v28  ;;  %v206_v44 = vld [vmem:[#allocation5 + $0x390] sm:$0xff]  ;;  %v108_v45 = vld [vmem:[#allocation5 + $0x80] sm:$0xff]  ;;  %v107_v48 = vld [vmem:[#allocation5 + $0x78] sm:$0xff] }
  0x45   :  { %487 = vmatpush1.msra.mxu1 %v215_v29  ;;  %880 = vperm.xlu1 %1250, %v877_v30   ;;  %v204_v46 = vld [vmem:[#allocation5 + $0x380] sm:$0xff]  ;;  %v203_v49 = vld [vmem:[#allocation5 + $0x378] sm:$0xff]  ;;  %v878_v50 = vld [vmem:[%s1524_s3 + $0x8] sm:$0xff]  ;;  %s1084_s3 = sshll.u32 %s1369_s2, 4  ;;  %s1085_s3 = int_to_ptr.vmem [resolvable:$true] %s1084_s3 }
  0x46   :  { %411 = vmatprep.subr.mxu0 %v117_v31  ;;  %488 = vmatprep.subr.mxu1 %v213_v32  ;;  %v105_v51 = vld [vmem:[#allocation5 + $0x68] sm:$0xff]  ;;  %v104_v53 = vld [vmem:[#allocation5 + $0x60] sm:$0xff]  ;;  %v102_v55 = vld [vmem:[#allocation5 + $0x50] sm:$0xff]  ;;  %s1331_s10 = scalar_lea.vmem %s1085_s3, 1536  ;;  %p1336_p7 = scmp.lt.s32.totalorder %s1085_s3, %s1085_s3 }
  0x47   :  { %412 = vmatpush1.msra.mxu0 %v116_v33  ;;  %489 = vmatpush1.msra.mxu1 %v212_v34  ;;  %v201_v52 = vld [vmem:[#allocation5 + $0x368] sm:$0xff]  ;;  %v200_v54 = vld [vmem:[#allocation5 + $0x360] sm:$0xff]  ;;  %v198_v56 = vld [vmem:[#allocation5 + $0x350] sm:$0xff]  ;;  %p1332_p6 = scmp.ne.s32.totalorder %s1085_s3, %s1331_s10  ;;  %p1337_p8 = scmp.lt.s32.totalorder %s1331_s10, %s1331_s10 }
  0x48   :  { %868 = vperm.xlu0 %1249, %v865_v35   ;;  %413 = vmatprep.subr.mxu0 %v114_v36  ;;  %v101_v57 = vld [vmem:[#allocation5 + $0x48] sm:$0xff]  ;;  %v99_v59 = vld [vmem:[#allocation5 + $0x38] sm:$0xff]  ;;  %v98_v61 = vld [vmem:[#allocation5 + $0x30] sm:$0xff] }
  0x49   :  { %490 = vmatprep.subr.mxu1 %v210_v37  ;;  %414 = vmatpush1.msra.mxu0 %v113_v38  ;;  %v197_v58 = vld [vmem:[#allocation5 + $0x348] sm:$0xff]  ;;  %v195_v60 = vld [vmem:[#allocation5 + $0x338] sm:$0xff]  ;;  %v194_v62 = vld [vmem:[#allocation5 + $0x330] sm:$0xff]  ;;  %p1338_p9 = por %p1337_p8, %p1336_p7 }
  0x4a   :  { %491 = vmatpush1.msra.mxu1 %v209_v39  ;;  %861 = vperm.xlu1 %1250, %v856_v40   ;;  %v96_v63 = vld [vmem:[#allocation5 + $0x20] sm:$0xff]  ;;  %v95_v1 = vld [vmem:[#allocation5 + $0x18] sm:$0xff]  ;;  %v93_v3 = vld [vmem:[#allocation5 + $0x8] sm:$0xff] }
  0x4b   :  { %415 = vmatprep.subr.mxu0 %v111_v41  ;;  %492 = vmatprep.subr.mxu1 %v207_v42  ;;  %v192_v0 = vld [vmem:[#allocation5 + $0x320] sm:$0xff]  ;;  %v191_v2 = vld [vmem:[#allocation5 + $0x318] sm:$0xff]  ;;  %v189_v4 = vld [vmem:[#allocation5 + $0x308] sm:$0xff]  ;;  %p1339_p10 = pnand %p1338_p9, %p1332_p6 }
  0x4c   :  { %416 = vmatpush1.msra.mxu0 %v110_v43  ;;  %493 = vmatpush1.msra.mxu1 %v206_v44  ;;  %v92_v5 = vld [vmem:[#allocation5] sm:$0xff]  ;;  %v186_v7 = vld [vmem:[#allocation5 + $0x2f0] sm:$0xff]  ;;  %v185_v9 = vld [vmem:[#allocation5 + $0x2e8] sm:$0xff] }
  0x4d   :  { %417 = vmatprep.subr.mxu0 %v108_v45  ;;  %494 = vmatprep.subr.mxu1 %v204_v46  ;;  %v188_v6 = vld [vmem:[#allocation5 + $0x300] sm:$0xff]  ;;  %v282_v8 = vld [vmem:[#allocation5 + $0x5f0] sm:$0xff]  ;;  %v281_v10 = vld [vmem:[#allocation5 + $0x5e8] sm:$0xff] }
  0x4e   :  { %871 = vperm.xlu0 %1249, %v866_v47   ;;  %418 = vmatpush1.msra.mxu0 %v107_v48  ;;  %v183_v11 = vld [vmem:[#allocation5 + $0x2d8] sm:$0xff]  ;;  %v182_v13 = vld [vmem:[#allocation5 + $0x2d0] sm:$0xff]  ;;  %v180_v15 = vld [vmem:[#allocation5 + $0x2c0] sm:$0xff] }
  0x4f   :  { %495 = vmatpush1.msra.mxu1 %v203_v49  ;;  %883 = vperm.xlu1 %1250, %v878_v50   ;;  %v279_v12 = vld [vmem:[#allocation5 + $0x5d8] sm:$0xff]  ;;  %v278_v14 = vld [vmem:[#allocation5 + $0x5d0] sm:$0xff]  ;;  %v276_v16 = vld [vmem:[#allocation5 + $0x5c0] sm:$0xff] }
  0x50   :  { %419 = vmatprep.subr.mxu0 %v105_v51  ;;  %496 = vmatprep.subr.mxu1 %v201_v52  ;;  %v179_v17 = vld [vmem:[#allocation5 + $0x2b8] sm:$0xff]  ;;  %v177_v19 = vld [vmem:[#allocation5 + $0x2a8] sm:$0xff]  ;;  %v176_v21 = vld [vmem:[#allocation5 + $0x2a0] sm:$0xff] }
  0x51   :  { %420 = vmatpush1.msra.mxu0 %v104_v53  ;;  %497 = vmatpush1.msra.mxu1 %v200_v54  ;;  %v275_v18 = vld [vmem:[#allocation5 + $0x5b8] sm:$0xff]  ;;  %v273_v20 = vld [vmem:[#allocation5 + $0x5a8] sm:$0xff]  ;;  %v272_v22 = vld [vmem:[#allocation5 + $0x5a0] sm:$0xff] }
  0x52   :  { %421 = vmatprep.subr.mxu0 %v102_v55  ;;  %498 = vmatprep.subr.mxu1 %v198_v56  ;;  %v174_v23 = vld [vmem:[#allocation5 + $0x290] sm:$0xff]  ;;  %v173_v25 = vld [vmem:[#allocation5 + $0x288] sm:$0xff]  ;;  %v171_v27 = vld [vmem:[#allocation5 + $0x278] sm:$0xff] }
  0x53   :  { %422 = vmatpush1.msra.mxu0 %v101_v57  ;;  %499 = vmatpush1.msra.mxu1 %v197_v58  ;;  %v270_v24 = vld [vmem:[#allocation5 + $0x590] sm:$0xff]  ;;  %v269_v26 = vld [vmem:[#allocation5 + $0x588] sm:$0xff]  ;;  %v267_v28 = vld [vmem:[#allocation5 + $0x578] sm:$0xff] }
  0x54   :  { %423 = vmatprep.subr.mxu0 %v99_v59  ;;  %500 = vmatprep.subr.mxu1 %v195_v60  ;;  %v170_v29 = vld [vmem:[#allocation5 + $0x270] sm:$0xff]  ;;  %v168_v31 = vld [vmem:[#allocation5 + $0x260] sm:$0xff]  ;;  %v167_v33 = vld [vmem:[#allocation5 + $0x258] sm:$0xff] }
  0x55   :  { %424 = vmatpush1.msra.mxu0 %v98_v61  ;;  %501 = vmatpush1.msra.mxu1 %v194_v62  ;;  %v266_v30 = vld [vmem:[#allocation5 + $0x570] sm:$0xff]  ;;  %v264_v32 = vld [vmem:[#allocation5 + $0x560] sm:$0xff]  ;;  %v263_v34 = vld [vmem:[#allocation5 + $0x558] sm:$0xff] }
  0x56   :  { %425 = vmatprep.subr.mxu0 %v96_v63  ;;  %502 = vmatprep.subr.mxu1 %v192_v0  ;;  %v165_v35 = vld [vmem:[#allocation5 + $0x248] sm:$0xff]  ;;  %v164_v37 = vld [vmem:[#allocation5 + $0x240] sm:$0xff]  ;;  %v162_v39 = vld [vmem:[#allocation5 + $0x230] sm:$0xff] }
  0x57   :  { %426 = vmatpush1.msra.mxu0 %v95_v1  ;;  %503 = vmatpush1.msra.mxu1 %v191_v2  ;;  %v261_v36 = vld [vmem:[#allocation5 + $0x548] sm:$0xff]  ;;  %v260_v38 = vld [vmem:[#allocation5 + $0x540] sm:$0xff]  ;;  %v258_v40 = vld [vmem:[#allocation5 + $0x530] sm:$0xff] }
  0x58   :  { %427 = vmatprep.subr.mxu0 %v93_v3  ;;  %504 = vmatprep.subr.mxu1 %v189_v4  ;;  %v161_v41 = vld [vmem:[#allocation5 + $0x228] sm:$0xff]  ;;  %v159_v43 = vld [vmem:[#allocation5 + $0x218] sm:$0xff]  ;;  %v158_v45 = vld [vmem:[#allocation5 + $0x210] sm:$0xff] }
  0x59   :  { %428 = vmatpush1.msra.mxu0 %v92_v5  ;;  %505 = vmatpush1.msra.mxu1 %v188_v6  ;;  %v257_v42 = vld [vmem:[#allocation5 + $0x528] sm:$0xff]  ;;  %v255_v44 = vld [vmem:[#allocation5 + $0x518] sm:$0xff]  ;;  %v254_v46 = vld [vmem:[#allocation5 + $0x510] sm:$0xff] }
  0x5a   :  { %429 = vmatprep.subr.mxu0 %v186_v7  ;;  %506 = vmatprep.subr.mxu1 %v282_v8  ;;  %v156_v47 = vld [vmem:[#allocation5 + $0x200] sm:$0xff]  ;;  %v155_v49 = vld [vmem:[#allocation5 + $0x1f8] sm:$0xff]  ;;  %v153_v51 = vld [vmem:[#allocation5 + $0x1e8] sm:$0xff] }
  0x5b   :  { %430 = vmatpush2.msra.mxu0 %v185_v9  ;;  %507 = vmatpush2.msra.mxu1 %v281_v10  ;;  %v252_v48 = vld [vmem:[#allocation5 + $0x500] sm:$0xff]  ;;  %v251_v50 = vld [vmem:[#allocation5 + $0x4f8] sm:$0xff]  ;;  %v249_v52 = vld [vmem:[#allocation5 + $0x4e8] sm:$0xff] }
  0x5c   :  { %431 = vmatprep.subr.mxu0 %v183_v11  ;;  %508 = vmatprep.subr.mxu1 %v279_v12  ;;  %v152_v53 = vld [vmem:[#allocation5 + $0x1e0] sm:$0xff]  ;;  %v150_v55 = vld [vmem:[#allocation5 + $0x1d0] sm:$0xff]  ;;  %v149_v57 = vld [vmem:[#allocation5 + $0x1c8] sm:$0xff] }
  0x5d   :  { %432 = vmatpush2.msra.mxu0 %v182_v13  ;;  %509 = vmatpush2.msra.mxu1 %v278_v14  ;;  %v248_v54 = vld [vmem:[#allocation5 + $0x4e0] sm:$0xff]  ;;  %v246_v56 = vld [vmem:[#allocation5 + $0x4d0] sm:$0xff]  ;;  %v245_v58 = vld [vmem:[#allocation5 + $0x4c8] sm:$0xff] }
  0x5e   :  { %433 = vmatprep.subr.mxu0 %v180_v15  ;;  %510 = vmatprep.subr.mxu1 %v276_v16  ;;  %v147_v59 = vld [vmem:[#allocation5 + $0x1b8] sm:$0xff]  ;;  %v146_v61 = vld [vmem:[#allocation5 + $0x1b0] sm:$0xff]  ;;  %v144_v63 = vld [vmem:[#allocation5 + $0x1a0] sm:$0xff] }
  0x5f   :  { %434 = vmatpush2.msra.mxu0 %v179_v17  ;;  %511 = vmatpush2.msra.mxu1 %v275_v18  ;;  %v243_v60 = vld [vmem:[#allocation5 + $0x4b8] sm:$0xff]  ;;  %v242_v62 = vld [vmem:[#allocation5 + $0x4b0] sm:$0xff]  ;;  %v240_v0 = vld [vmem:[#allocation5 + $0x4a0] sm:$0xff] }
  0x60   :  { %435 = vmatprep.subr.mxu0 %v177_v19  ;;  %512 = vmatprep.subr.mxu1 %v273_v20  ;;  %v143_v1 = vld [vmem:[#allocation5 + $0x198] sm:$0xff]  ;;  %v141_v3 = vld [vmem:[#allocation5 + $0x188] sm:$0xff]  ;;  %v140_v5 = vld [vmem:[#allocation5 + $0x180] sm:$0xff] }
  0x61   :  { %436 = vmatpush2.msra.mxu0 %v176_v21  ;;  %513 = vmatpush2.msra.mxu1 %v272_v22  ;;  %v239_v2 = vld [vmem:[#allocation5 + $0x498] sm:$0xff]  ;;  %v237_v4 = vld [vmem:[#allocation5 + $0x488] sm:$0xff]  ;;  %v236_v7 = vld [vmem:[#allocation5 + $0x480] sm:$0xff] }
  0x62   :  { %437 = vmatprep.subr.mxu0 %v174_v23  ;;  %514 = vmatprep.subr.mxu1 %v270_v24  ;;  %v1449_v6 = vld [vmem:[#allocation2 + $0x8] sm:$0xff]  ;;  %v1451_v8 = vld [vmem:[#allocation2] sm:$0xff]  ;;  %v1453_v9 = vld [vmem:[#allocation2 + $0x18] sm:$0xff] }
  0x63   :  { %438 = vmatpush2.msra.mxu0 %v173_v25  ;;  %515 = vmatpush2.msra.mxu1 %v269_v26  ;;  %v330_v10 = vld [vmem:[#allocation5 + $0x770] sm:$0xff]  ;;  %v187_v11 = vld [vmem:[#allocation5 + $0x2f8] sm:$0xff]  ;;  %v329_v13 = vld [vmem:[#allocation5 + $0x768] sm:$0xff] }
  0x64   :  { %439 = vmatprep.subr.mxu0 %v171_v27  ;;  %516 = vmatprep.subr.mxu1 %v267_v28  ;;  %v1456_v12 = vld [vmem:[#allocation2 + $0x10] sm:$0xff]  ;;  %v139_v14 = vld [vmem:[#allocation5 + $0x178] sm:$0xff]  ;;  %v184_v16 = vld [vmem:[#allocation5 + $0x2e0] sm:$0xff] }
  0x65   :  { %440 = vmatpush2.msra.mxu0 %v170_v29  ;;  %517 = vmatpush2.msra.mxu1 %v266_v30  ;;  %v327_v15 = vld [vmem:[#allocation5 + $0x758] sm:$0xff]  ;;  %v326_v17 = vld [vmem:[#allocation5 + $0x750] sm:$0xff]  ;;  %v136_v18 = vld [vmem:[#allocation5 + $0x160] sm:$0xff] }
  0x66   :  { %441 = vmatprep.subr.mxu0 %v168_v31  ;;  %518 = vmatprep.subr.mxu1 %v264_v32  ;;  %v324_v19 = vld [vmem:[#allocation5 + $0x740] sm:$0xff]  ;;  %v181_v20 = vld [vmem:[#allocation5 + $0x2c8] sm:$0xff]  ;;  %v323_v21 = vld [vmem:[#allocation5 + $0x738] sm:$0xff] }
  0x67   :  { %442 = vmatpush2.msra.mxu0 %v167_v33  ;;  %519 = vmatpush2.msra.mxu1 %v263_v34  ;;  %v133_v22 = vld [vmem:[#allocation5 + $0x148] sm:$0xff]  ;;  %v178_v24 = vld [vmem:[#allocation5 + $0x2b0] sm:$0xff]  ;;  %v320_v25 = vld [vmem:[#allocation5 + $0x720] sm:$0xff] }
  0x68   :  { %443 = vmatprep.subr.mxu0 %v165_v35  ;;  %520 = vmatprep.subr.mxu1 %v261_v36  ;;  %v321_v23 = vld [vmem:[#allocation5 + $0x728] sm:$0xff]  ;;  %v130_v26 = vld [vmem:[#allocation5 + $0x130] sm:$0xff]  ;;  %v175_v28 = vld [vmem:[#allocation5 + $0x298] sm:$0xff] }
  0x69   :  { %444 = vmatpush2.msra.mxu0 %v164_v37  ;;  %521 = vmatpush2.msra.mxu1 %v260_v38  ;;  %v318_v27 = vld [vmem:[#allocation5 + $0x710] sm:$0xff]  ;;  %v317_v29 = vld [vmem:[#allocation5 + $0x708] sm:$0xff]  ;;  %v127_v30 = vld [vmem:[#allocation5 + $0x118] sm:$0xff] }
  0x6a   :  { %445 = vmatprep.subr.mxu0 %v162_v39  ;;  %522 = vmatprep.subr.mxu1 %v258_v40  ;;  %v315_v31 = vld [vmem:[#allocation5 + $0x6f8] sm:$0xff]  ;;  %v172_v32 = vld [vmem:[#allocation5 + $0x280] sm:$0xff]  ;;  %v314_v33 = vld [vmem:[#allocation5 + $0x6f0] sm:$0xff] }
  0x6b   :  { %446 = vmatpush2.msra.mxu0 %v161_v41  ;;  %523 = vmatpush2.msra.mxu1 %v257_v42  ;;  %v124_v34 = vld [vmem:[#allocation5 + $0x100] sm:$0xff]  ;;  %v169_v36 = vld [vmem:[#allocation5 + $0x268] sm:$0xff]  ;;  %v311_v37 = vld [vmem:[#allocation5 + $0x6d8] sm:$0xff] }
  0x6c   :  { %447 = vmatprep.subr.mxu0 %v159_v43  ;;  %524 = vmatprep.subr.mxu1 %v255_v44  ;;  %v312_v35 = vld [vmem:[#allocation5 + $0x6e0] sm:$0xff]  ;;  %v121_v38 = vld [vmem:[#allocation5 + $0xe8] sm:$0xff]  ;;  %v166_v40 = vld [vmem:[#allocation5 + $0x250] sm:$0xff] }
  0x6d   :  { %448 = vmatpush2.msra.mxu0 %v158_v45  ;;  %525 = vmatpush2.msra.mxu1 %v254_v46  ;;  %v309_v39 = vld [vmem:[#allocation5 + $0x6c8] sm:$0xff]  ;;  %v308_v41 = vld [vmem:[#allocation5 + $0x6c0] sm:$0xff]  ;;  %v118_v42 = vld [vmem:[#allocation5 + $0xd0] sm:$0xff] }
  0x6e   :  { %449 = vmatprep.subr.mxu0 %v156_v47  ;;  %526 = vmatprep.subr.mxu1 %v252_v48  ;;  %v306_v43 = vld [vmem:[#allocation5 + $0x6b0] sm:$0xff]  ;;  %v163_v44 = vld [vmem:[#allocation5 + $0x238] sm:$0xff]  ;;  %v305_v45 = vld [vmem:[#allocation5 + $0x6a8] sm:$0xff] }
  0x6f   :  { %450 = vmatpush2.msra.mxu0 %v155_v49  ;;  %527 = vmatpush2.msra.mxu1 %v251_v50  ;;  %v115_v46 = vld [vmem:[#allocation5 + $0xb8] sm:$0xff]  ;;  %v160_v48 = vld [vmem:[#allocation5 + $0x220] sm:$0xff]  ;;  %v302_v49 = vld [vmem:[#allocation5 + $0x690] sm:$0xff] }
  0x70   :  { %451 = vmatprep.subr.mxu0 %v153_v51  ;;  %528 = vmatprep.subr.mxu1 %v249_v52  ;;  %v303_v47 = vld [vmem:[#allocation5 + $0x698] sm:$0xff]  ;;  %v112_v50 = vld [vmem:[#allocation5 + $0xa0] sm:$0xff]  ;;  %v157_v52 = vld [vmem:[#allocation5 + $0x208] sm:$0xff] }
  0x71   :  { %452 = vmatpush2.msra.mxu0 %v152_v53  ;;  %529 = vmatpush2.msra.mxu1 %v248_v54  ;;  %v300_v51 = vld [vmem:[#allocation5 + $0x680] sm:$0xff]  ;;  %v299_v53 = vld [vmem:[#allocation5 + $0x678] sm:$0xff]  ;;  %v109_v54 = vld [vmem:[#allocation5 + $0x88] sm:$0xff] }
  0x72   :  { %453 = vmatprep.subr.mxu0 %v150_v55  ;;  %530 = vmatprep.subr.mxu1 %v246_v56  ;;  %v297_v55 = vld [vmem:[#allocation5 + $0x668] sm:$0xff]  ;;  %v154_v56 = vld [vmem:[#allocation5 + $0x1f0] sm:$0xff] }
  0x73   :  { %454 = vmatpush2.msra.mxu0 %v149_v57  ;;  %531 = vmatpush2.msra.mxu1 %v245_v58  ;;  %v296_v57 = vld [vmem:[#allocation5 + $0x660] sm:$0xff]  ;;  %v106_v58 = vld [vmem:[#allocation5 + $0x70] sm:$0xff] }
  0x74   :  { %455 = vmatprep.subr.mxu0 %v147_v59  ;;  %532 = vmatprep.subr.mxu1 %v243_v60  ;;  %v294_v59 = vld [vmem:[#allocation5 + $0x650] sm:$0xff]  ;;  %v151_v60 = vld [vmem:[#allocation5 + $0x1d8] sm:$0xff] }
  0x75   :  { %456 = vmatpush2.msra.mxu0 %v146_v61  ;;  %533 = vmatpush2.msra.mxu1 %v242_v62  ;;  %v293_v61 = vld [vmem:[#allocation5 + $0x648] sm:$0xff]  ;;  %v103_v62 = vld [vmem:[#allocation5 + $0x58] sm:$0xff] }
  0x76   :  { %457 = vmatprep.subr.mxu0 %v144_v63  ;;  %534 = vmatprep.subr.mxu1 %v240_v0  ;;  %v291_v63 = vld [vmem:[#allocation5 + $0x638] sm:$0xff]  ;;  %v148_v0 = vld [vmem:[#allocation5 + $0x1c0] sm:$0xff] }
  0x77   :  { %458 = vmatpush2.msra.mxu0 %v143_v1  ;;  %535 = vmatpush2.msra.mxu1 %v239_v2  ;;  %v290_v1 = vld [vmem:[#allocation5 + $0x630] sm:$0xff]  ;;  %v100_v2 = vld [vmem:[#allocation5 + $0x40] sm:$0xff] }
  0x78   :  { %459 = vmatprep.subr.mxu0 %v141_v3  ;;  %536 = vmatprep.subr.mxu1 %v237_v4  ;;  %v1461_v3 = vld [vmem:[#allocation2 + $0x48] sm:$0xff]  ;;  %v288_v4 = vld [vmem:[#allocation5 + $0x620] sm:$0xff] }
  0x79   :  { %460 = vmatpush2.msra.mxu0 %v140_v5  ;;  %461 = vmatprep.mubr.f32.mxu0 %v1449_v6  ;;  %v145_v5 = vld [vmem:[#allocation5 + $0x1a8] sm:$0xff] }
  0x7a   :  { %537 = vmatpush2.msra.mxu1 %v236_v7  ;;  %462 = vmatmul.mubr.f32.vlgmr.msra.gmra.mxu0 %v1451_v8  ;;  %v1463_v7 = vld [vmem:[#allocation2 + $0x40] sm:$0xff] }
  0x7b   :  { %538 = vmatprep.mubr.f32.mxu1 %v1453_v9  ;;  %551 = vmatprep.subr.mxu0 %v330_v10  ;;  %v287_v10 = vld [vmem:[#allocation5 + $0x618] sm:$0xff] }
  0x7c   :  { %1104 = vmatprep.subr.mxu1 %v187_v11  ;;  %539 = vmatmul.mubr.f32.vlgmr.msra.gmra.mxu1 %v1456_v12  ;;  %v97_v11 = vld [vmem:[#allocation5 + $0x28] sm:$0xff] }
  0x7d   :  { %552 = vmatpush1.msra.mxu0 %v329_v13  ;;  %1105 = vmatpush3.msra.mxu1 %v139_v14  ;;  %v285_v13 = vld [vmem:[#allocation5 + $0x608] sm:$0xff]  ;;  %v142_v14 = vld [vmem:[#allocation5 + $0x190] sm:$0xff] }
  0x7e   :  { %553 = vmatprep.subr.mxu0 %v327_v15  ;;  %1106 = vmatprep.subr.mxu1 %v184_v16  ;;  %v284_v15 = vld [vmem:[#allocation5 + $0x600] sm:$0xff]  ;;  %v94_v16 = vld [vmem:[#allocation5 + $0x10] sm:$0xff] }
  0x7f   :  { %554 = vmatpush1.msra.mxu0 %v326_v17  ;;  %1107 = vmatpush3.msra.mxu1 %v136_v18  ;;  %v378_v17 = vld [vmem:[#allocation5 + $0x8f0] sm:$0xff]  ;;  %v283_v18 = vld [vmem:[#allocation5 + $0x5f8] sm:$0xff] }
  0x80   :  { %555 = vmatprep.subr.mxu0 %v324_v19  ;;  %1108 = vmatprep.subr.mxu1 %v181_v20  ;;  %v377_v19 = vld [vmem:[#allocation5 + $0x8e8] sm:$0xff]  ;;  %v375_v20 = vld [vmem:[#allocation5 + $0x8d8] sm:$0xff] }
  0x81   :  { %556 = vmatpush1.msra.mxu0 %v323_v21  ;;  %1109 = vmatpush3.msra.mxu1 %v133_v22  ;;  %v235_v21 = vld [vmem:[#allocation5 + $0x478] sm:$0xff]  ;;  %v374_v22 = vld [vmem:[#allocation5 + $0x8d0] sm:$0xff] }
  0x82   :  { %557 = vmatprep.subr.mxu0 %v321_v23  ;;  %1110 = vmatprep.subr.mxu1 %v178_v24  ;;  %v280_v23 = vld [vmem:[#allocation5 + $0x5e0] sm:$0xff] }
  0x83   :  { %558 = vmatpush1.msra.mxu0 %v320_v25  ;;  %1111 = vmatpush3.msra.mxu1 %v130_v26  ;;  %v372_v24 = vld [vmem:[#allocation5 + $0x8c0] sm:$0xff]  ;;  %v371_v26 = vld [vmem:[#allocation5 + $0x8b8] sm:$0xff] }
  0x84   :  { %559 = vmatprep.subr.mxu0 %v318_v27  ;;  %1112 = vmatprep.subr.mxu1 %v175_v28  ;;  %v232_v25 = vld [vmem:[#allocation5 + $0x460] sm:$0xff]  ;;  %v277_v27 = vld [vmem:[#allocation5 + $0x5c8] sm:$0xff] }
  0x85   :  { %560 = vmatpush1.msra.mxu0 %v317_v29  ;;  %1113 = vmatpush3.msra.mxu1 %v127_v30  ;;  %v369_v28 = vld [vmem:[#allocation5 + $0x8a8] sm:$0xff]  ;;  %v368_v30 = vld [vmem:[#allocation5 + $0x8a0] sm:$0xff] }
  0x86   :  { %561 = vmatprep.subr.mxu0 %v315_v31  ;;  %1114 = vmatprep.subr.mxu1 %v172_v32  ;;  %v229_v29 = vld [vmem:[#allocation5 + $0x448] sm:$0xff]  ;;  %v366_v31 = vld [vmem:[#allocation5 + $0x890] sm:$0xff] }
  0x87   :  { %562 = vmatpush1.msra.mxu0 %v314_v33  ;;  %1115 = vmatpush3.msra.mxu1 %v124_v34  ;;  %v226_v32 = vld [vmem:[#allocation5 + $0x430] sm:$0xff]  ;;  %v365_v33 = vld [vmem:[#allocation5 + $0x888] sm:$0xff]  ;;  %v363_v34 = vld [vmem:[#allocation5 + $0x878] sm:$0xff] }
  0x88   :  { %563 = vmatprep.subr.mxu0 %v312_v35  ;;  %1116 = vmatprep.subr.mxu1 %v169_v36  ;;  %v223_v35 = vld [vmem:[#allocation5 + $0x418] sm:$0xff]  ;;  %v362_v36 = vld [vmem:[#allocation5 + $0x870] sm:$0xff] }
  0x89   :  { %564 = vmatpush1.msra.mxu0 %v311_v37  ;;  %1117 = vmatpush3.msra.mxu1 %v121_v38  ;;  %v268_v37 = vld [vmem:[#allocation5 + $0x580] sm:$0xff]  ;;  %v1469_v38 = vld [vmem:[#allocation2 + $0x38] sm:$0xff] }
  0x8a   :  { %565 = vmatprep.subr.mxu0 %v309_v39  ;;  %1118 = vmatprep.subr.mxu1 %v166_v40  ;;  %v220_v39 = vld [vmem:[#allocation5 + $0x400] sm:$0xff] }
  0x8b   :  { %566 = vmatpush1.msra.mxu0 %v308_v41  ;;  %1119 = vmatpush3.msra.mxu1 %v118_v42  ;;  %v360_v40 = vld [vmem:[#allocation5 + $0x860] sm:$0xff]  ;;  %v265_v41 = vld [vmem:[#allocation5 + $0x568] sm:$0xff]  ;;  %v1471_v42 = vld [vmem:[#allocation2 + $0x30] sm:$0xff] }
  0x8c   :  { %567 = vmatprep.subr.mxu0 %v306_v43  ;;  %1120 = vmatprep.subr.mxu1 %v163_v44  ;;  %v359_v43 = vld [vmem:[#allocation5 + $0x858] sm:$0xff]  ;;  %v217_v44 = vld [vmem:[#allocation5 + $0x3e8] sm:$0xff] }
  0x8d   :  { %568 = vmatpush1.msra.mxu0 %v305_v45  ;;  %1121 = vmatpush3.msra.mxu1 %v115_v46  ;;  %v357_v45 = vld [vmem:[#allocation5 + $0x848] sm:$0xff]  ;;  %v262_v46 = vld [vmem:[#allocation5 + $0x550] sm:$0xff] }
  0x8e   :  { %569 = vmatprep.subr.mxu0 %v303_v47  ;;  %1122 = vmatprep.subr.mxu1 %v160_v48  ;;  %v356_v47 = vld [vmem:[#allocation5 + $0x840] sm:$0xff]  ;;  %v214_v48 = vld [vmem:[#allocation5 + $0x3d0] sm:$0xff] }
  0x8f   :  { %570 = vmatpush1.msra.mxu0 %v302_v49  ;;  %1123 = vmatpush3.msra.mxu1 %v112_v50  ;;  %v354_v49 = vld [vmem:[#allocation5 + $0x830] sm:$0xff]  ;;  %v259_v50 = vld [vmem:[#allocation5 + $0x538] sm:$0xff] }
  0x90   :  { %571 = vmatprep.subr.mxu0 %v300_v51  ;;  %1124 = vmatprep.subr.mxu1 %v157_v52  ;;  %v353_v51 = vld [vmem:[#allocation5 + $0x828] sm:$0xff]  ;;  %v211_v52 = vld [vmem:[#allocation5 + $0x3b8] sm:$0xff] }
  0x91   :  { %572 = vmatpush1.msra.mxu0 %v299_v53  ;;  %1125 = vmatpush3.msra.mxu1 %v109_v54  ;;  %v351_v53 = vld [vmem:[#allocation5 + $0x818] sm:$0xff]  ;;  %v256_v54 = vld [vmem:[#allocation5 + $0x520] sm:$0xff] }
  0x92   :  { %573 = vmatprep.subr.mxu0 %v297_v55  ;;  %1126 = vmatprep.subr.mxu1 %v154_v56  ;;  %v350_v55 = vld [vmem:[#allocation5 + $0x810] sm:$0xff]  ;;  %v208_v56 = vld [vmem:[#allocation5 + $0x3a0] sm:$0xff] }
  0x93   :  { %574 = vmatpush1.msra.mxu0 %v296_v57  ;;  %1127 = vmatpush3.msra.mxu1 %v106_v58  ;;  %v348_v57 = vld [vmem:[#allocation5 + $0x800] sm:$0xff]  ;;  %v253_v58 = vld [vmem:[#allocation5 + $0x508] sm:$0xff] }
  0x94   :  { %575 = vmatprep.subr.mxu0 %v294_v59  ;;  %1128 = vmatprep.subr.mxu1 %v151_v60  ;;  %v347_v59 = vld [vmem:[#allocation5 + $0x7f8] sm:$0xff]  ;;  %v205_v60 = vld [vmem:[#allocation5 + $0x388] sm:$0xff] }
  0x95   :  { %576 = vmatpush1.msra.mxu0 %v293_v61  ;;  %1129 = vmatpush3.msra.mxu1 %v103_v62  ;;  %v345_v61 = vld [vmem:[#allocation5 + $0x7e8] sm:$0xff]  ;;  %v250_v62 = vld [vmem:[#allocation5 + $0x4f0] sm:$0xff] }
  0x96   :  { %577 = vmatprep.subr.mxu0 %v291_v63  ;;  %1130 = vmatprep.subr.mxu1 %v148_v0  ;;  %v344_v63 = vld [vmem:[#allocation5 + $0x7e0] sm:$0xff]  ;;  %v202_v0 = vld [vmem:[#allocation5 + $0x370] sm:$0xff] }
  0x97   :  { %578 = vmatpush1.msra.mxu0 %v290_v1  ;;  %1131 = vmatpush3.msra.mxu1 %v100_v2  ;;  %v342_v1 = vld [vmem:[#allocation5 + $0x7d0] sm:$0xff]  ;;  %v247_v2 = vld [vmem:[#allocation5 + $0x4d8] sm:$0xff] }
  0x98   :  { %544 = vmatprep.mubr.f32.mxu1 %v1461_v3  ;;  %579 = vmatprep.subr.mxu0 %v288_v4  ;;  %v341_v4 = vld [vmem:[#allocation5 + $0x7c8] sm:$0xff] }
  0x99   :  { %1132 = vmatprep.subr.mxu1 %v145_v5  ;;  %545 = vmatmul.mubr.f32.gmra.mxu1 %v1463_v7  ;;  %v199_v5 = vld [vmem:[#allocation5 + $0x358] sm:$0xff] }
  0x9a   :  { %580 = vmatpush1.msra.mxu0 %v287_v10  ;;  %1133 = vmatpush3.msra.mxu1 %v97_v11  ;;  %v339_v10 = vld [vmem:[#allocation5 + $0x7b8] sm:$0xff]  ;;  %v244_v11 = vld [vmem:[#allocation5 + $0x4c0] sm:$0xff] }
  0x9b   :  { %581 = vmatprep.subr.mxu0 %v285_v13  ;;  %1134 = vmatprep.subr.mxu1 %v142_v14  ;;  %v338_v13 = vld [vmem:[#allocation5 + $0x7b0] sm:$0xff]  ;;  %v196_v14 = vld [vmem:[#allocation5 + $0x340] sm:$0xff] }
  0x9c   :  { %582 = vmatpush1.msra.mxu0 %v284_v15  ;;  %1135 = vmatpush3.msra.mxu1 %v94_v16  ;;  %v336_v15 = vld [vmem:[#allocation5 + $0x7a0] sm:$0xff]  ;;  %v241_v16 = vld [vmem:[#allocation5 + $0x4a8] sm:$0xff] }
  0x9d   :  { %583 = vmatprep.subr.mxu0 %v378_v17  ;;  %692 = vmatprep.mubr.f32.mxu1 %v1449_v6  ;;  %v274_v6 = vld [vmem:[#allocation5 + $0x5b0] sm:$0xff]  ;;  %v335_v17 = vld [vmem:[#allocation5 + $0x798] sm:$0xff] }
  0x9e   :  { %1142 = vmatprep.subr.mxu1 %v283_v18  ;;  %584 = vmatpush2.msra.mxu0 %v377_v19  ;;  %v193_v18 = vld [vmem:[#allocation5 + $0x328] sm:$0xff] }
  0x9f   :  { %693 = vmatmul.mubr.f32.vlgmr.msra.gmra.mxu1 %v1451_v8  ;;  %585 = vmatprep.subr.mxu0 %v375_v20  ;;  %v271_v8 = vld [vmem:[#allocation5 + $0x598] sm:$0xff]  ;;  %v333_v19 = vld [vmem:[#allocation5 + $0x788] sm:$0xff]  ;;  %v238_v20 = vld [vmem:[#allocation5 + $0x490] sm:$0xff] }
  0xa0   :  { %1143 = vmatpush3.msra.mxu1 %v235_v21  ;;  %586 = vmatpush2.msra.mxu0 %v374_v22  ;;  %v332_v21 = vld [vmem:[#allocation5 + $0x780] sm:$0xff]  ;;  %v1477_v22 = vld [vmem:[#allocation2 + $0x28] sm:$0xff] }
  0xa1   :  { %1144 = vmatprep.subr.mxu1 %v280_v23  ;;  %587 = vmatprep.subr.mxu0 %v372_v24  ;;  %v190_v23 = vld [vmem:[#allocation5 + $0x310] sm:$0xff]  ;;  %v1479_v24 = vld [vmem:[#allocation2 + $0x20] sm:$0xff] }
  0xa2   :  { %1145 = vmatpush3.msra.mxu1 %v232_v25  ;;  %588 = vmatpush2.msra.mxu0 %v371_v26  ;;  %v382_v25 = vlaneseq }
  0xa3   :  { %1146 = vmatprep.subr.mxu1 %v277_v27  ;;  %589 = vmatprep.subr.mxu0 %v369_v28  ;;  %v379_v27 = vld [vmem:[#allocation5 + $0x8f8] sm:$0xff] }
  0xa4   :  { %1147 = vmatpush3.msra.mxu1 %v229_v29  ;;  %590 = vmatpush2.msra.mxu0 %v368_v30  ;;  %v1482_v28 = vld [vmem:[#allocation2 + $0x58] sm:$0xff]  ;;  %v906_v30 = vld [vmem:[#allocation8 + $0x68] sm:$0xff] }
  0xa5   :  { %1148 = vmatprep.subr.mxu1 %v274_v6  ;;  %591 = vmatprep.subr.mxu0 %v366_v31  ;;  %v331_v29 = vld [vmem:[#allocation5 + $0x778] sm:$0xff]  ;;  %v376_v31 = vld [vmem:[#allocation5 + $0x8e0] sm:$0xff] }
  0xa6   :  { %1149 = vmatpush3.msra.mxu1 %v226_v32  ;;  %592 = vmatpush2.msra.mxu0 %v365_v33  ;;  %v905_v32 = vld [vmem:[#allocation8 + $0x60] sm:$0xff] }
  0xa7   :  { %1150 = vmatprep.subr.mxu1 %v271_v8  ;;  %593 = vmatprep.subr.mxu0 %v363_v34  ;;  %v328_v33 = vld [vmem:[#allocation5 + $0x760] sm:$0xff]  ;;  %v1489_v8 = vand.u32 127, %v382_v25  ;;  %v903_v34 = vld [vmem:[#allocation8 + $0x50] sm:$0xff] }
  0xa8   :  { %1151 = vmatpush3.msra.mxu1 %v223_v35  ;;  %594 = vmatpush2.msra.mxu0 %v362_v36  ;;  %v1491_v35 = vld [vmem:[#allocation2 + $0x50] sm:$0xff] }
  0xa9   :  { %1152 = vmatprep.subr.mxu1 %v268_v37  ;;  %467 = vmatprep.mubr.f32.mxu0 %v1469_v38  ;;  %v325_v37 = vld [vmem:[#allocation5 + $0x748] sm:$0xff] }
  0xaa   :  { %1153 = vmatpush3.msra.mxu1 %v220_v39  ;;  %595 = vmatprep.subr.mxu0 %v360_v40  ;;  %v900_v39 = vld [vmem:[#allocation8 + $0x38] sm:$0xff]  ;;  %v322_v40 = vld [vmem:[#allocation5 + $0x730] sm:$0xff] }
  0xab   :  { %1154 = vmatprep.subr.mxu1 %v265_v41  ;;  %468 = vmatmul.mubr.f32.gmra.mxu0 %v1471_v42  ;;  %v899_v41 = vld [vmem:[#allocation8 + $0x30] sm:$0xff] }
  0xac   :  { %596 = vmatpush2.msra.mxu0 %v359_v43  ;;  %1155 = vmatpush3.msra.mxu1 %v217_v44  ;;  %v367_v43 = vld [vmem:[#allocation5 + $0x898] sm:$0xff] }
  0xad   :  { %597 = vmatprep.subr.mxu0 %v357_v45  ;;  %1156 = vmatprep.subr.mxu1 %v262_v46  ;;  %v319_v44 = vld [vmem:[#allocation5 + $0x718] sm:$0xff]  ;;  %v897_v45 = vld [vmem:[#allocation8 + $0x20] sm:$0xff] }
  0xae   :  { %598 = vmatpush2.msra.mxu0 %v356_v47  ;;  %1157 = vmatpush3.msra.mxu1 %v214_v48  ;;  %v364_v46 = vld [vmem:[#allocation5 + $0x880] sm:$0xff] }
  0xaf   :  { %599 = vmatprep.subr.mxu0 %v354_v49  ;;  %1158 = vmatprep.subr.mxu1 %v259_v50  ;;  %v316_v48 = vld [vmem:[#allocation5 + $0x700] sm:$0xff]  ;;  %v361_v50 = vld [vmem:[#allocation5 + $0x868] sm:$0xff] }
  0xb0   :  { %600 = vmatpush2.msra.mxu0 %v353_v51  ;;  %1159 = vmatpush3.msra.mxu1 %v211_v52  ;;  %v896_v49 = vld [vmem:[#allocation8 + $0x18] sm:$0xff]  ;;  %v894_v51 = vld [vmem:[#allocation8 + $0x8] sm:$0xff] }
  0xb1   :  { %601 = vmatprep.subr.mxu0 %v351_v53  ;;  %1160 = vmatprep.subr.mxu1 %v256_v54  ;;  %v313_v52 = vld [vmem:[#allocation5 + $0x6e8] sm:$0xff] }
  0xb2   :  { %602 = vmatpush2.msra.mxu0 %v350_v55  ;;  %1161 = vmatpush3.msra.mxu1 %v208_v56  ;;  %v893_v53 = vld [vmem:[#allocation8] sm:$0xff]  ;;  %v310_v55 = vld [vmem:[#allocation5 + $0x6d0] sm:$0xff] }
  0xb3   :  { %603 = vmatprep.subr.mxu0 %v348_v57  ;;  %1162 = vmatprep.subr.mxu1 %v253_v58  ;;  %v907_v56 = vld [vmem:[#allocation8 + $0x70] sm:$0xff]  ;;  %v1368_v57 = vmov 0.0  }
  0xb4   :  { %604 = vmatpush2.msra.mxu0 %v347_v59  ;;  %1163 = vmatpush3.msra.mxu1 %v205_v60  ;;  %v307_v59 = vld [vmem:[#allocation5 + $0x6b8] sm:$0xff] }
  0xb5   :  { %605 = vmatprep.subr.mxu0 %v345_v61  ;;  %1164 = vmatprep.subr.mxu1 %v250_v62  ;;  %v904_v60 = vld [vmem:[#allocation8 + $0x58] sm:$0xff] }
  0xb6   :  { %606 = vmatpush2.msra.mxu0 %v344_v63  ;;  %1165 = vmatpush3.msra.mxu1 %v202_v0  ;;  %v352_v61 = vld [vmem:[#allocation5 + $0x820] sm:$0xff]  ;;  %v349_v0 = vld [vmem:[#allocation5 + $0x808] sm:$0xff] }
  0xb7   :  { %607 = vmatprep.subr.mxu0 %v342_v1  ;;  %1166 = vmatprep.subr.mxu1 %v247_v2  ;;  %v304_v62 = vld [vmem:[#allocation5 + $0x6a0] sm:$0xff]  ;;  %v301_v2 = vld [vmem:[#allocation5 + $0x688] sm:$0xff] }
  0xb8   :  { %608 = vmatpush2.msra.mxu0 %v341_v4  ;;  %1167 = vmatpush3.msra.mxu1 %v199_v5  ;;  %v901_v63 = vld [vmem:[#allocation8 + $0x40] sm:$0xff]  ;;  %v898_v4 = vld [vmem:[#allocation8 + $0x28] sm:$0xff] }
  0xb9   :  { %609 = vmatprep.subr.mxu0 %v339_v10  ;;  %1168 = vmatprep.subr.mxu1 %v244_v11  ;;  %v346_v5 = vld [vmem:[#allocation5 + $0x7f0] sm:$0xff] }
  0xba   :  { %610 = vmatpush2.msra.mxu0 %v338_v13  ;;  %697 = vmatprep.mubr.f32.mxu1 %v1469_v38  ;;  %v370_v38 = vld [vmem:[#allocation5 + $0x8b0] sm:$0xff]  ;;  %v343_v13 = vld [vmem:[#allocation5 + $0x7d8] sm:$0xff] }
  0xbb   :  { %1169 = vmatpush3.msra.mxu1 %v196_v14  ;;  %611 = vmatprep.subr.mxu0 %v336_v15  ;;  %v298_v10 = vld [vmem:[#allocation5 + $0x670] sm:$0xff]  ;;  %v295_v14 = vld [vmem:[#allocation5 + $0x658] sm:$0xff]  ;;  %v340_v15 = vld [vmem:[#allocation5 + $0x7c0] sm:$0xff] }
  0xbc   :  { %698 = vmatmul.mubr.f32.gmra.mxu1 %v1471_v42  ;;  %1170 = vmatprep.subr.mxu1 %v241_v16  ;;  %v895_v11 = vld [vmem:[#allocation8 + $0x10] sm:$0xff]  ;;  %v292_v16 = vld [vmem:[#allocation5 + $0x640] sm:$0xff] }
  0xbd   :  { %612 = vmatpush2.msra.mxu0 %v335_v17  ;;  %1171 = vmatpush3.msra.mxu1 %v193_v18  ;;  %v337_v17 = vld [vmem:[#allocation5 + $0x7a8] sm:$0xff] }
  0xbe   :  { %613 = vmatprep.subr.mxu0 %v333_v19  ;;  %1172 = vmatprep.subr.mxu1 %v238_v20  ;;  %v859_v26 = vpop.permute.xlu0 %858  ;;  %v289_v18 = vld [vmem:[#allocation5 + $0x628] sm:$0xff]  ;;  %v334_v19 = vld [vmem:[#allocation5 + $0x790] sm:$0xff] }
  0xbf   :  { %614 = vmatpush2.msra.mxu0 %v332_v21  ;;  %615 = vmatprep.mubr.f32.mxu0 %v1477_v22  ;;  %vm863_vm0 = vcmp.eq.s32.totalorder %v1489_v8, %v859_v26  ;;  %v286_v20 = vld [vmem:[#allocation5 + $0x610] sm:$0xff]  ;;  %v383_v26 = vshrl.u32 %v382_v25, 7 }
  0xc0   :  { %1173 = vmatpush3.msra.mxu1 %v190_v23  ;;  %767 = vmatprep.mubr.f32.mxu1 %v1453_v9  ;;  %v881_v6 = vpop.permute.xlu1 %880  ;;  %v373_v9 = vld [vmem:[#allocation5 + $0x8c8] sm:$0xff] }
  0xc1   :  { %616 = vmatmul.mubr.f32.vlgmr.msra.gmra.mxu0 %v1479_v24  ;;  %768 = vmatmul.mubr.f32.vlgmr.msra.gmra.mxu1 %v1456_v12  ;;  %v902_v12 = vld [vmem:[#allocation8 + $0x48] sm:$0xff]  ;;  %vm885_vm2 = vcmp.eq.s32.totalorder %v1489_v8, %v881_v6 }
  0xc2   :  { %1180 = vmatprep.subr.mxu0 %v379_v27  ;;  %621 = vmatprep.mubr.f32.mxu0 %v1482_v28 }
  0xc3   :  { %1181 = vmatpush3.msra.mxu0 %v331_v29  ;;  %937 = vmatprep.subr.mxu1 %v906_v30  ;;  %v869_v36 = vpop.permute.xlu0 %868  ;;  %v384_v29 = vsub.s32 0, %v383_v26  ;;  %v380_v30 = vld [vmem:[#allocation7] sm:$0x7] }
  0xc4   :  { %1182 = vmatprep.subr.mxu0 %v376_v31  ;;  %938 = vmatpush1.msra.mxu1 %v905_v32  ;;  %vm873_vm1 = vcmp.eq.s32.totalorder %v1489_v8, %v869_v36  ;;  %v388_v31 = vsub.s32 1, %v383_v26 }
  0xc5   :  { %1183 = vmatpush3.msra.mxu0 %v328_v33  ;;  %939 = vmatprep.subr.mxu1 %v903_v34  ;;  %v862_v42 = vpop.permute.xlu1 %861  ;;  %vm875_vm3 = vmor %vm863_vm0, %vm873_vm1  ;;  %v385_v32 = vrot.slane %v380_v30, %v384_v29 }
  0xc6   :  { %622 = vmatmul.mubr.f32.gmra.mxu0 %v1491_v35  ;;  %1184 = vmatprep.subr.mxu0 %v373_v9  ;;  %vm887_vm4 = vmor %vm875_vm3, %vm885_vm2  ;;  %vm864_vm5 = vcmp.eq.s32.totalorder %v1489_v8, %v862_v42  ;;  %v389_v34 = vrot.slane %v380_v30, %v388_v31 }
  0xc7   :  { %1185 = vmatpush3.msra.mxu0 %v325_v37  ;;  %940 = vmatpush1.msra.mxu1 %v902_v12  ;;  %v1098_v58 = vsel %vm887_vm4, 1.0, %v1368_v57 }
  0xc8   :  { %1186 = vmatprep.subr.mxu0 %v370_v38  ;;  %941 = vmatprep.subr.mxu1 %v900_v39 }
  0xc9   :  { %1187 = vmatpush3.msra.mxu0 %v322_v40  ;;  %942 = vmatpush1.msra.mxu1 %v899_v41  ;;  %v872_v47 = vpop.permute.xlu0 %871 }
  0xca   :  { %1188 = vmatprep.subr.mxu0 %v367_v43  ;;  %772 = vmatprep.mubr.f32.mxu1 %v1461_v3  ;;  %vm874_vm6 = vcmp.eq.s32.totalorder %v1489_v8, %v872_v47  ;;  %v884_v54 = vpop.permute.xlu1 %883  ;;  %v358_v3 = vld [vmem:[#allocation5 + $0x850] sm:$0xff] }
  0xcb   :  { %1189 = vmatpush3.msra.mxu0 %v319_v44  ;;  %943 = vmatprep.subr.mxu1 %v897_v45  ;;  %vm876_vm7 = vmor %vm864_vm5, %vm874_vm6  ;;  %vm886_vm9 = vcmp.eq.s32.totalorder %v1489_v8, %v884_v54 }
  0xcc   :  { %1190 = vmatprep.subr.mxu0 %v364_v46  ;;  %773 = vmatmul.mubr.f32.gmra.mxu1 %v1463_v7  ;;  %v355_v7 = vld [vmem:[#allocation5 + $0x838] sm:$0xff]  ;;  %vm888_vm10 = vmor %vm876_vm7, %vm886_vm9 }
  0xcd   :  { %1191 = vmatpush3.msra.mxu0 %v316_v48  ;;  %944 = vmatpush1.msra.mxu1 %v896_v49  ;;  %v1099_v1 = vsel %vm888_vm10, 1.0, %v1368_v57 }
  0xce   :  { %1192 = vmatprep.subr.mxu0 %v361_v50  ;;  %945 = vmatprep.subr.mxu1 %v894_v51 }
  0xcf   :  { %1193 = vmatpush3.msra.mxu0 %v313_v52  ;;  %946 = vmatpush1.msra.mxu1 %v893_v53 }
  0xd0   :  { %1194 = vmatprep.subr.mxu0 %v358_v3  ;;  %979 = vmatprep.mubr.f32.mxu1 %v1368_v57 }
  0xd1   :  { %1195 = vmatpush3.msra.mxu0 %v310_v55  ;;  %1225 = vmatprep.subr.mxu1 %v907_v56 }
  0xd2   :  { %1196 = vmatprep.subr.mxu0 %v355_v7  ;;  %1100 = vmatmul.mubr.msk.f32.vlgmr.msra.gmra.mxu1 %vm908_vm8, %v1098_v58 }
  0xd3   :  { %1226 = vmatpush3.msra.mxu1 %v907_v56  ;;  %1197 = vmatpush3.msra.mxu0 %v307_v59 }
  0xd4   :  { %1227 = vmatprep.subr.mxu1 %v904_v60  ;;  %1198 = vmatprep.subr.mxu0 %v352_v61 }
  0xd5   :  { %1228 = vmatpush3.msra.mxu1 %v904_v60  ;;  %1199 = vmatpush3.msra.mxu0 %v304_v62 }
  0xd6   :  { %1229 = vmatprep.subr.mxu1 %v901_v63  ;;  %1200 = vmatprep.subr.mxu0 %v349_v0 }
  0xd7   :  { %985 = vmatprep.mubr.f32.mxu1 %v1368_v57  ;;  %1230 = vmatpush3.msra.mxu1 %v901_v63 }
  0xd8   :  { %1201 = vmatpush3.msra.mxu0 %v301_v2  ;;  %1101 = vmatmul.mubr.msk.f32.gmra.mxu1 %vm908_vm8, %v1099_v1 }
  0xd9   :  { %1231 = vmatprep.subr.mxu1 %v898_v4  ;;  %1202 = vmatprep.subr.mxu0 %v346_v5 }
  0xda   :  { %1232 = vmatpush3.msra.mxu1 %v898_v4  ;;  %1203 = vmatpush3.msra.mxu0 %v298_v10 }
  0xdb   :  { %1233 = vmatprep.subr.mxu1 %v895_v11  ;;  %1204 = vmatprep.subr.mxu0 %v343_v13 }
  0xdc   :  { %1234 = vmatpush3.msra.mxu1 %v895_v11  ;;  %1235 = vmatprep.mubr.msk.f32.mxu1 %vm908_vm8, %v1098_v58  ;;  %v392_v58 = vsub.s32 2, %v383_v26 }
  0xdd   :  { %1205 = vmatpush3.msra.mxu0 %v295_v14  ;;  %1236 = vmatmul.mubr.msk.f32.vlgmr.msra.gmra.mxu1 %vm908_vm8, %v1099_v1 }
  0xde   :  { %1206 = vmatprep.subr.mxu0 %v340_v15  ;;  %842 = vmatprep.mubr.f32.mxu0 %v1477_v22  ;;  %v393_v60 = vrot.slane %v380_v30, %v392_v58 }
  0xdf   :  { %1207 = vmatpush3.msra.mxu0 %v292_v16 }
  0xe0   :  { %1208 = vmatprep.subr.mxu0 %v337_v17 }
  0xe1   :  { %1209 = vmatpush3.msra.mxu0 %v289_v18 }
  0xe2   :  { %1210 = vmatprep.subr.mxu0 %v334_v19 }
  0xe3   :  { %1211 = vmatpush3.msra.mxu0 %v286_v20 }
  0xe4   :  { %843 = vmatmul.mubr.f32.vlgmr.msra.gmra.mxu0 %v1479_v24 }
  0xe5   :  { %847 = vmatprep.mubr.f32.mxu0 %v1482_v28 }
  0xe8   :  { %848 = vmatmul.mubr.f32.gmra.mxu0 %v1491_v35 }
 0x13a   :  { %v463_v6 = vpop.f32.mrf.mxu0 }
 0x13b   :  { %v464_v24 = vadd.f32 %v463_v6, %v385_v32 }
 0x13c   :  { %v540_v21 = vpop.f32.mrf.mxu1  ;;  %v465_v8 = vpop.f32.mrf.mxu0 }
 0x13d   :  { %v466_v28 = vadd.f32 %v465_v8, %v389_v34  ;;  %v541_v12 = vadd.f32 %v540_v21, %v464_v24 }
 0x13e   :  { %v542_v23 = vpop.f32.mrf.mxu1 }
 0x13f   :  { %v543_v25 = vadd.f32 %v542_v23, %v466_v28 }
 0x159   :  { %v546_v27 = vpop.f32.mrf.mxu1 }
 0x15b   :  { %v548_v22 = vpop.f32.mrf.mxu1 }
 0x15f   :  { %v1136_v33 = vpop.f32.mrf.mxu1 }
 0x161   :  { %v1137_v36 = vpop.f32.mrf.mxu1 }
 0x162   :  { %v1138_v61 = vadd.f32 %v1137_v36, %v1136_v33 }
 0x164   :  { %v695_v1 = vadd.f32 %v1138_v61, %v393_v60 }
 0x16b   :  { %v469_v9 = vpop.f32.mrf.mxu0 }
 0x16c   :  { %v470_v38 = vadd.f32 %v469_v9, %v385_v32 }
 0x16d   :  { %v471_v35 = vpop.f32.mrf.mxu0 }
 0x16e   :  { %v472_v42 = vadd.f32 %v471_v35, %v389_v34  ;;  %v547_v45 = vadd.f32 %v546_v27, %v470_v38 }
 0x170   :  { %v549_v48 = vadd.f32 %v548_v22, %v472_v42 }
 0x17c   :  { %v1139_v37 = vpop.f32.mrf.mxu1 }
 0x17e   :  { %v1140_v40 = vpop.f32.mrf.mxu1 }
 0x17f   :  { %v1141_v62 = vadd.f32 %v1140_v40, %v1139_v37 }
 0x181   :  { %v617_v39 = vpop.f32.mrf.mxu0  ;;  %v1174_v46 = vpop.f32.mrf.mxu1  ;;  %v700_v4 = vadd.f32 %v1141_v62, %v393_v60 }
 0x182   :  { %v618_v41 = vadd.f32 %v617_v39, %v541_v12 }
 0x183   :  { %v619_v43 = vpop.f32.mrf.mxu0  ;;  %v1175_v52 = vpop.f32.mrf.mxu1 }
 0x184   :  { %1067 = vst [vmem:[#allocation10] sm:$0xff] %v618_v41  ;;  %v620_v44 = vadd.f32 %v619_v43, %v543_v25  ;;  %v1176_v63 = vadd.f32 %v1175_v52, %v1174_v46 }
 0x186   :  { %1068 = vst [vmem:[#allocation10 + $0x8] sm:$0xff] %v620_v44  ;;  %v623_v47 = vpop.f32.mrf.mxu0  ;;  %v770_v5 = vadd.f32 %v1176_v63, %v695_v1 }
 0x187   :  { %v624_v49 = vadd.f32 %v623_v47, %v547_v45 }
 0x188   :  { %v625_v50 = vpop.f32.mrf.mxu0 }
 0x189   :  { %1073 = vst [vmem:[#allocation10 + $0x30] sm:$0xff] %v624_v49  ;;  %v626_v51 = vadd.f32 %v625_v50, %v549_v48 }
 0x18b   :  { %1074 = vst [vmem:[#allocation10 + $0x38] sm:$0xff] %v626_v51 }
 0x18c   :  { %v1177_v53 = vpop.f32.mrf.mxu1 }
 0x18e   :  { %v1178_v54 = vpop.f32.mrf.mxu1 }
 0x18f   :  { %v1179_v10 = vadd.f32 %v1178_v54, %v1177_v53 }
 0x191   :  { %v775_v16 = vadd.f32 %v1179_v10, %v700_v4 }
 0x192   :  { %v981_v3 = vpop.f32.mrf.mxu1 }
 0x193   :  { %1070 = vst [vmem:[#allocation10 + $0x18] sm:$0xff] %v981_v3 }
 0x194   :  { %v983_v55 = vpop.f32.mrf.mxu1 }
 0x195   :  { %1071 = vst [vmem:[#allocation10 + $0x20] sm:$0xff] %v983_v55 }
 0x198   :  { %v987_v56 = vpop.f32.mrf.mxu1 }
 0x199   :  { %1076 = vst [vmem:[#allocation10 + $0x48] sm:$0xff] %v987_v56 }
 0x19a   :  { %v989_v57 = vpop.f32.mrf.mxu1 }
 0x19b   :  { %1077 = vst [vmem:[#allocation10 + $0x50] sm:$0xff] %v989_v57 }
 0x19d   :  { %v1237_v7 = vpop.f32.mrf.mxu1 }
 0x19e   :  { %1078 = vst [vmem:[#allocation10 + $0x58] sm:$0xff] %v1237_v7 }
 0x19f   :  { %v1058_v59 = vpop.f32.mrf.mxu1 }
 0x1a0   :  { %1072 = vst [vmem:[#allocation10 + $0x28] sm:$0xff] %v1058_v59 }
 0x1a4   :  { %v1212_v0 = vpop.f32.mrf.mxu0 }
 0x1a6   :  { %v1213_v2 = vpop.f32.mrf.mxu0 }
 0x1a7   :  { %v1214_v11 = vadd.f32 %v1213_v2, %v1212_v0 }
 0x1a8   :  { %v1215_v13 = vpop.f32.mrf.mxu0 }
 0x1a9   :  { %v845_v14 = vadd.f32 %v1214_v11, %v770_v5 }
 0x1aa   :  { %v1216_v15 = vpop.f32.mrf.mxu0 }
 0x1ab   :  { %1069 = vst [vmem:[#allocation10 + $0x10] sm:$0xff] %v845_v14  ;;  %v1217_v17 = vadd.f32 %v1216_v15, %v1215_v13 }
 0x1ad   :  { %v850_v18 = vadd.f32 %v1217_v17, %v775_v16 }
 0x1af   :  { %1075 = vst [vmem:[#allocation10 + $0x40] sm:$0xff] %v850_v18 }
 0x1b0   :  { %1342 = shalt.err (!%p1339_p10)
}
 0x1b1   :  { %1090 = dma.vmem_to_hbm [thread:$0]  %s1085_s3, 1536, %s1528_s7, [#allocation4], %s1363_s11, %s1363_s11, %s1364_s12  }
 0x1b2   :  { %1357 = dma.done.wait [#allocation4], 1536  }
 0x1b3   :  { %1358 = vsyncadd [#allocation4], 4294965760 }
 0x1b4   :  { %1094 = vsyncpa [#allocation3], 1 }
 0x1b5   :  { %1095 = vsyncpa [#allocation6], 1 }
 0x1b6   :  { %1096 = vsyncpa [#allocation9], 1 }
 0x1b7   :  { %1097 = vsyncpa [#allocation4], 1 }

</bundles_post_ra>
